<compile_context>
chip_gen: v7x
topology: tpu7x:2x2x1
jax: 0.10.0
libtpu: 0.0.40
codegen_flags: <defaults>
</compile_context>

<pallas_src>
import functools
import math

import jax
import jax.numpy as jnp
from jax.experimental import pallas as pl
from jax.experimental.pallas import tpu as pltpu


def _pe_add_kernel(x_ref, pe_ref, o_ref, *, scale):
    """o = x * sqrt(d_model) + pe  (single fused multiply-add per tile)."""
    x = x_ref[0].astype(jnp.float32)        # (TS, DL)
    pe = pe_ref[...].astype(jnp.float32)    # (TS, DL)
    o_ref[0] = (x * scale + pe).astype(o_ref.dtype)


def _make_pe_table(seq_len: int, d_model: int, dtype) -> jax.Array:
    """Plain-JAX PE table (computed once per shape, outside the kernel)."""
    position = jnp.arange(seq_len, dtype=jnp.float32)[:, None]               # (S, 1)
    div_term = jnp.exp(
        jnp.arange(0, d_model, 2, dtype=jnp.float32)
        * (-math.log(10000.0) / d_model)
    )                                                                        # (D/2,)
    angles = position * div_term                                             # (S, D/2)
    # Interleave [sin, cos]: columns 0::2 = sin, 1::2 = cos (matches torch).
    pe = jnp.stack([jnp.sin(angles), jnp.cos(angles)], axis=-1)
    return pe.reshape(seq_len, d_model).astype(dtype)


def _fold_factor(seq_len: int, d_model: int) -> int:
    """Largest f dividing seq_len with (f*d_model) % 128 == 0 (lane-dense)."""
    if d_model % 128 == 0:
        return 1
    for f in range(min(seq_len, 1024), 0, -1):
        if seq_len % f == 0 and (f * d_model) % 128 == 0:
            return f
    return 1


def _seq_tile(seq_len: int, row_bytes: int) -> int:
    """Rows per block: ~2 MiB per buffer, multiple-of-8 sublanes (or full)."""
    target = 2 * 1024 * 1024
    ts = (target // max(row_bytes, 1)) // 8 * 8
    ts = max(ts, 8)
    return seq_len if ts >= seq_len else ts


@jax.jit
def positional_encoding(xs: jax.Array) -> jax.Array:
    """xs: (batch, seq_len, d_model) -> xs * sqrt(d_model) + pe."""
    B, S, D = xs.shape
    if D % 2 != 0:
        # The PyTorch module itself requires an even d_model.
        raise ValueError("d_model must be even.")

    # Batch-invariant PE, hoisted out of the kernel; stored in xs.dtype.
    pe = _make_pe_table(S, D, xs.dtype)

    # Lane-dense layout: fold seq rows into lanes when d_model % 128 != 0.
    f = _fold_factor(S, D)
    S2, D2 = S // f, f * D
    xs_v = xs.reshape(B, S2, D2)
    pe_v = pe.reshape(S2, D2)

    TS = _seq_tile(S2, D2 * xs.dtype.itemsize)
    grid = (pl.cdiv(S2, TS), B)  # batch innermost -> pe tile stays VMEM-resident

    kernel = functools.partial(_pe_add_kernel, scale=float(math.sqrt(D)))

    out = pl.pallas_call(
        kernel,
        out_shape=jax.ShapeDtypeStruct((B, S2, D2), xs.dtype),
        grid_spec=pltpu.PrefetchScalarGridSpec(
            num_scalar_prefetch=0,
            grid=grid,
            in_specs=[
                pl.BlockSpec((1, TS, D2), lambda s, b: (b, s, 0)),  # xs tile
                pl.BlockSpec((TS, D2), lambda s, b: (s, 0)),        # pe tile (batch-invariant)
            ],
            out_specs=pl.BlockSpec((1, TS, D2), lambda s, b: (b, s, 0)),
        ),
        compiler_params=pltpu.CompilerParams(
            dimension_semantics=("parallel", "parallel"),
        ),
        input_output_aliases={0: 0},  # output may reuse the xs buffer
    )(xs_v, pe_v)

    return out.reshape(B, S, D)


def _reference(xs: jax.Array) -> jax.Array:
    """Pure-JAX reference mirroring the PyTorch module."""
    B, S, D = xs.shape
    position = jnp.arange(S, dtype=jnp.float32)[:, None]
    div_term = jnp.exp(
        jnp.arange(0, D, 2, dtype=jnp.float32) * (-math.log(10000.0) / D)
    )
    pe = jnp.zeros((S, D), jnp.float32)
    pe = pe.at[:, 0::2].set(jnp.sin(position * div_term))
    pe = pe.at[:, 1::2].set(jnp.cos(position * div_term))
    return (xs.astype(jnp.float32) * math.sqrt(D) + pe[None]).astype(xs.dtype)


if __name__ == "__main__":
    key = jax.random.PRNGKey(0)

    # Case 1: lane-sparse d_model (exercises the seq->lane fold path).
    B, S, D = 2, 8, 32
    xs1 = jax.random.normal(key, (B, S, D), dtype=jnp.float32)
    ref1 = _reference(xs1)
    out1 = jax.block_until_ready(positional_encoding(xs1))
    assert out1.shape == ref1.shape and out1.dtype == ref1.dtype
    assert jnp.allclose(out1, ref1, atol=1e-5, rtol=1e-5)

    # Case 2: lane-dense d_model (no fold, direct tiling).
    xs2 = jax.random.normal(jax.random.PRNGKey(1), (2, 16, 128), dtype=jnp.float32)
    ref2 = _reference(xs2)
    out2 = jax.block_until_ready(positional_encoding(xs2))
    assert out2.shape == ref2.shape and out2.dtype == ref2.dtype
    assert jnp.allclose(out2, ref2, atol=1e-5, rtol=1e-5)

    print("KERNEL_OK")
</pallas_src>

<mosaic_0001>
module attributes {stable_mosaic.version = 11 : i64} {
  func.func @_pe_add_kernel(%arg0: i32, %arg1: i32, %arg2: memref<1x1x256xf32, #tpu.memory_space<vmem>>, %arg3: memref<1x256xf32, #tpu.memory_space<vmem>>, %arg4: memref<1x1x256xf32, #tpu.memory_space<vmem>>) attributes {dimension_semantics = [#tpu.dimension_semantics<parallel>, #tpu.dimension_semantics<parallel>], iteration_bounds = array<i64: 1, 2>, scalar_prefetch = 0 : i64, scratch_operands = 0 : i64, tpu.core_type = #tpu.core_type<tc>, window_params = [{transform_indices = @transform_0, window_bounds = array<i64: 1, 1, 256>}, {transform_indices = @transform_1, window_bounds = array<i64: 1, 256>}, {transform_indices = @transform_2, window_bounds = array<i64: 1, 1, 256>}]} {
    %c0 = arith.constant 0 : index
    %c0_0 = arith.constant 0 : index
    %c0_1 = arith.constant 0 : index
    %0 = vector.load %arg2[%c0, %c0_0, %c0_1] : memref<1x1x256xf32, #tpu.memory_space<vmem>>, vector<1x1x256xf32>
    %1 = vector.shape_cast %0 : vector<1x1x256xf32> to vector<1x256xf32>
    %c0_2 = arith.constant 0 : index
    %c0_3 = arith.constant 0 : index
    %2 = vector.load %arg3[%c0_2, %c0_3] : memref<1x256xf32, #tpu.memory_space<vmem>>, vector<1x256xf32>
    %cst = arith.constant 5.65685415 : f32
    %3 = vector.broadcast %cst : f32 to vector<1x256xf32>
    %4 = arith.mulf %1, %3 : vector<1x256xf32>
    %5 = arith.addf %4, %2 : vector<1x256xf32>
    %c0_4 = arith.constant 0 : index
    %c0_5 = arith.constant 0 : index
    %c0_6 = arith.constant 0 : index
    %6 = vector.load %arg4[%c0_4, %c0_5, %c0_6] : memref<1x1x256xf32, #tpu.memory_space<vmem>>, vector<1x1x256xf32>
    %7 = vector.shape_cast %6 : vector<1x1x256xf32> to vector<1x256xf32>
    %8 = vector.shape_cast %5 : vector<1x256xf32> to vector<1x1x256xf32>
    tpu.vector_store %arg4[%c0_4, %c0_5, %c0_6], %8 {strides = array<i32>} : memref<1x1x256xf32, #tpu.memory_space<vmem>>, vector<1x1x256xf32>,
    return
  }
  func.func @transform_0(%arg0: i32, %arg1: i32) -> (i32, i32, i32) {
    %c0_i32 = arith.constant 0 : i32
    %c0_i32_0 = arith.constant 0 : i32
    return %arg1, %arg0, %c0_i32 : i32, i32, i32
  }
  func.func @transform_1(%arg0: i32, %arg1: i32) -> (i32, i32) {
    %c0_i32 = arith.constant 0 : i32
    %c0_i32_0 = arith.constant 0 : i32
    return %arg0, %c0_i32 : i32, i32
  }
  func.func @transform_2(%arg0: i32, %arg1: i32) -> (i32, i32, i32) {
    %c0_i32 = arith.constant 0 : i32
    %c0_i32_0 = arith.constant 0 : i32
    return %arg1, %arg0, %c0_i32 : i32, i32, i32
  }
}

</mosaic_0001>

<bundles_post_ra>
// kernel: positional_encoding.1
= control target key start
LH: loop header
LB: loop body
LE: loop exit
PB: predicated region body
PF: predicated region fallthrough
CT: control target
= control target key end

     0   :  { %s373_s9 = smov 0   ;;  %s375_s10 = smov 0   ;;  %s397_s0 = inlined_call_operand.vmem [shape: f32[2,1,256], index: 0, kind: input, shape index: {}, may-alias: {0,2}]   ;;  %s398_s1 = inlined_call_operand.vmem [shape: f32[1,256], index: 1, kind: input, shape index: {}]   ;;  %s399_s2 = inlined_call_operand.vmem [shape: f32[2,1,256], index: 2, kind: output, shape index: {}, may-alias: {0,2}]  }
   0x1   :  { %s377_s11 = smov 0  }
   0x2 LB: > { %s21_s12 = sadd.s32 1, %s352_s10  ;;  %p305_p0 = scmp.ge.s32.totalorder %s356_s11, 1  ;;  %s356_s11 = sphi %s377_s11, %s12_s11   ;;  %s352_s10 = sphi %s375_s10, %s401_s10   ;;  %s348_s9 = sphi %s373_s9, %s400_s9  }
   0x3   : > { %p22_p1 = scmp.ge.s32.totalorder %s21_s12, 2  ;;  %p140_p2 = scmp.lt.s32.totalorder %s356_s11, 3 }
   0x5   : > { %s403_s12 = smov (%p22_p1, %s21_s12), 0  ;;  %p141_p3 = pnand %p305_p0, %p140_p2 }
   0x6   : > { %p172_p4 = scmp.lt.s32.totalorder (!%p141_p3), %s348_s9, 1  ;;  %v196_v0 = vlaneseq (!%p141_p3)  ;;  %v193_v2 = vld [vmem:[%s398_s1] sm:$0x3] (!%p141_p3) }
   0x7   : > { %144 = sbr.rel (%p141_p3) target bundleno = 23 (0x17), region = 28 }
   0x8   : > { %vm198_vm0 = vcmp.lt.s32.totalorder (!%p141_p3), %v196_v0, 256 }
   0xe   : > { %s405_s9 = smov (!%p172_p4, %s348_s9), 1 }
   0xf   : > { %s306_s13 = sshll.u32 %s405_s9, 1 }
  0x10   : > { %s179_s16 = scalar_lea.vmem %s397_s0, %s306_s13  ;;  %s191_s21 = scalar_lea.vmem %s399_s2, %s306_s13 }
  0x11   : > { %v192_v1 = vld [vmem:[%s179_s16] sm:$0x3] }
  0x12   : > { %v194_v3 = vmul.f32 5.656854, %v192_v1 }
  0x14   : > { %v195_v4 = vadd.f32 %v194_v3, %v193_v2 }
  0x16   : > { %200 = vst.msk [vmem:[%s191_s21] sm:$0x3] %vm198_vm0, %v195_v4 }
  0x17 PF: > { %s12_s11 = sadd.s32 1, %s356_s11   ;;  %s400_s9 = smov %s352_s10 }
  0x18   : > { %p9_p5 = scmp.ge.s32.totalorder %s12_s11, 4   ;;  %s401_s10 = smov %s403_s12 }
  0x1a   :  { %11 = sbr.rel (!%p9_p5) target bundleno = 2 (0x2), region = 61 }

</bundles_post_ra>
